<compile_context>
chip_gen: v6e
topology: v6e:2x2x1
jax: 0.10.0
libtpu: 0.0.40
codegen_flags: <defaults>
</compile_context>

<pallas_src>
import functools
import math

import jax
import jax.numpy as jnp
from jax.experimental import pallas as pl
from jax.experimental.pallas import tpu as pltpu

LANE = 128   # feature dims padded to multiples of this (lane-dense loads/stores)


def _round_up(n, m):
    return ((n + m - 1) // m) * m


def _cdiv(a, b):
    return -(-a // b)


def _make_kernel(n_hidden, compute_dtype):
    """n_hidden Linear+ReLU layers, then skip-dot + last-layer-dot, f32 accumulation."""

    def kernel(*refs):
        # refs: x, (w_0, b_0), ..., (w_{H-1}, b_{H-1}), w_skip_t, w_last_t, b_last, out
        x_ref = refs[0]
        hidden_refs = refs[1:1 + 2 * n_hidden]
        w_skip_ref = refs[1 + 2 * n_hidden]
        w_last_ref = refs[2 + 2 * n_hidden]
        b_last_ref = refs[3 + 2 * n_hidden]
        out_ref = refs[4 + 2 * n_hidden]

        x = x_ref[...]                                  # (tile_b, d0_pad) compute_dtype
        cur = x
        for i in range(n_hidden):
            w = hidden_refs[2 * i][...]                 # (d_i_pad, d_{i+1}_pad) compute_dtype
            b = hidden_refs[2 * i + 1][...]             # (1, d_{i+1}_pad) f32
            acc = jnp.dot(cur, w, preferred_element_type=jnp.float32)
            cur = jnp.maximum(acc + b, 0.0).astype(compute_dtype)   # bias/ReLU in f32

        # Skip path + last layer as two MXU dots accumulated in f32 — no lane-axis
        # concat, no VMEM temporary, data stays in the MXU accumulation path.
        out = jnp.dot(x, w_skip_ref[...], preferred_element_type=jnp.float32)
        out = out + jnp.dot(cur, w_last_ref[...], preferred_element_type=jnp.float32)
        out = out + b_last_ref[...]
        out_ref[...] = out.astype(out_ref.dtype)

    return kernel


def prepare_params(w_skip, layer_ws, layer_bs, *, dims, compute_dtype="float32"):
    """One-time weight plumbing: transpose to (in, out), zero-pad to 128 lanes, cast.

    Call once and reuse the returned tuple on every forward call so the jitted
    forward is just (pad x) + pallas_call — no per-call HBM round-trips for weights.

    Returns: (w0_t, b0, ..., w_{H-1}_t, b_{H-1}, w_skip_t, w_last_t, b_last)
    """
    cdt = jnp.dtype(compute_dtype)
    n_layers = len(dims) - 1
    n_hidden = n_layers - 1
    pdims = tuple(_round_up(d, LANE) for d in dims)

    def pad2(a, rows, cols):
        return jnp.pad(a, ((0, rows - a.shape[0]), (0, cols - a.shape[1])))

    params = []
    for i in range(n_hidden):
        w_t = pad2(layer_ws[i].T, pdims[i], pdims[i + 1]).astype(cdt)
        b = jnp.pad(layer_bs[i], (0, pdims[i + 1] - dims[i + 1]))
        b = b.reshape(1, pdims[i + 1]).astype(jnp.float32)
        params += [w_t, b]

    w_skip_t = pad2(w_skip.T, pdims[0], pdims[-1]).astype(cdt)
    w_last_t = pad2(layer_ws[-1].T, pdims[-2], pdims[-1]).astype(cdt)
    b_last = jnp.pad(layer_bs[-1], (0, pdims[-1] - dims[-1]))
    b_last = b_last.reshape(1, pdims[-1]).astype(jnp.float32)
    params += [w_skip_t, w_last_t, b_last]
    return tuple(params)


@functools.partial(jax.jit, static_argnames=("dims", "compute_dtype", "max_tile_b"))
def general_model_forward(x, params, *, dims, compute_dtype="float32", max_tile_b=512):
    """Fused GeneralModel forward.

    x      : (B, dims[0]) f32
    params : output of prepare_params(...) with matching dims/compute_dtype
    """
    cdt = jnp.dtype(compute_dtype)
    n_layers = len(dims) - 1
    n_hidden = n_layers - 1
    B = x.shape[0]
    pdims = tuple(_round_up(d, LANE) for d in dims)

    # Sublane packing: bf16 packs 16 rows per vreg sublane group, f32 packs 8.
    sublane = 16 if cdt == jnp.bfloat16 else 8

    # Rebalanced batch tiling: at most (sublane - 1) rows of pure padding, and
    # either exactly 1 grid step (small B -> no exposed DMA / per-step overhead)
    # or several steps (large B -> pipelining actually hides the x/out DMAs).
    n_tiles = _cdiv(B, max_tile_b)
    tile_b = _round_up(_cdiv(B, n_tiles), sublane)
    b_pad = tile_b * n_tiles

    x_p = jnp.pad(x, ((0, b_pad - B), (0, pdims[0] - dims[0]))).astype(cdt)

    in_specs = [pl.BlockSpec((tile_b, pdims[0]), lambda i: (i, 0))]
    # Constant index_map -> each weight/bias DMA'd once, VMEM-resident across steps.
    # (If dims ever scale into the multi-MiB range: consider pipeline_mode=
    #  pl.Buffered(1) on these constant blocks and an explicit vmem_limit_bytes,
    #  especially for v7x's 64 MiB/TC; irrelevant at these toy sizes.)
    for p in params:
        in_specs.append(pl.BlockSpec(p.shape, lambda i: (0, 0)))

    out_specs = pl.BlockSpec((tile_b, pdims[-1]), lambda i: (i, 0))
    out_shape = jax.ShapeDtypeStruct((b_pad, pdims[-1]), jnp.float32)

    # Advisory cost hint for XLA's scheduler.
    flops = 2 * b_pad * (
        sum(pdims[i] * pdims[i + 1] for i in range(n_hidden))
        + pdims[0] * pdims[-1]            # skip dot
        + pdims[-2] * pdims[-1])          # last-layer dot
    bytes_accessed = (int(x_p.size) * x_p.dtype.itemsize
                      + sum(int(p.size) * p.dtype.itemsize for p in params)
                      + b_pad * pdims[-1] * 4)
    cost = pl.CostEstimate(flops=flops, transcendentals=0,
                           bytes_accessed=bytes_accessed)

    out_p = pl.pallas_call(
        _make_kernel(n_hidden, cdt),
        out_shape=out_shape,
        grid=(n_tiles,),
        in_specs=in_specs,
        out_specs=out_specs,
        compiler_params=pltpu.CompilerParams(
            dimension_semantics=("parallel",)),   # megacore-shards batch steps on v7x
        cost_estimate=cost,
    )(x_p, *params)

    return out_p[:B, :dims[-1]]


def init_params(key, dims):
    """Deterministic init mimicking nn.Linear default U[-1/sqrt(fan_in), +] (PyTorch layout)."""
    n_layers = len(dims) - 1
    keys = jax.random.split(key, 2 * n_layers + 1)

    bound = 1.0 / math.sqrt(dims[0])
    w_skip = jax.random.uniform(keys[0], (dims[-1], dims[0]), jnp.float32,
                                minval=-bound, maxval=bound)
    ws, bs = [], []
    for i in range(n_layers):
        fan_in, fan_out = dims[i], dims[i + 1]
        bound = 1.0 / math.sqrt(fan_in)
        w = jax.random.uniform(keys[1 + 2 * i], (fan_out, fan_in), jnp.float32,
                               minval=-bound, maxval=bound)
        b = jax.random.uniform(keys[2 + 2 * i], (fan_out,), jnp.float32,
                               minval=-bound, maxval=bound)
        ws.append(w)
        bs.append(b)
    return w_skip, tuple(ws), tuple(bs)


def reference_forward(x, w_skip, layer_ws, layer_bs):
    """Pure-JAX reference matching the PyTorch module (unpadded, f32)."""
    skip = x @ w_skip.T
    cur = x
    n = len(layer_ws)
    for i, (w, b) in enumerate(zip(layer_ws, layer_bs)):
        cur = cur @ w.T + b
        if i != n - 1:
            cur = jnp.maximum(cur, 0.0)
    return skip + cur


if __name__ == "__main__":
    dims = (16, 32, 16)     # GeneralModel(dims=[16, 32, 16])
    batch = 64              # small -> single batch tile / single grid step

    key = jax.random.PRNGKey(0)
    k_x, k_p = jax.random.split(key)
    x = jax.random.normal(k_x, (batch, dims[0]), jnp.float32)
    w_skip, layer_ws, layer_bs = init_params(k_p, dims)

    ref = reference_forward(x, w_skip, layer_ws, layer_bs)

    # f32 matmul-input path. Tolerance allows for the MXU routing f32 operands
    # through bf16 passes at default precision on some TPU generations.
    params_f32 = prepare_params(w_skip, layer_ws, layer_bs, dims=dims,
                                compute_dtype="float32")
    out = general_model_forward(x, params_f32, dims=dims, compute_dtype="float32")
    out = jax.block_until_ready(out)
    assert out.shape == (batch, dims[-1])
    assert jnp.allclose(out, ref, atol=1e-2, rtol=1e-2), "f32 mismatch vs reference"

    # bf16 matmul-input fast path (v6e/v7x), f32 accumulation: loose check.
    # Note: the skip path also runs in bf16 inputs here (documented precision loss).
    params_bf16 = prepare_params(w_skip, layer_ws, layer_bs, dims=dims,
                                 compute_dtype="bfloat16")
    out_bf16 = general_model_forward(x, params_bf16, dims=dims,
                                     compute_dtype="bfloat16")
    out_bf16 = jax.block_until_ready(out_bf16)
    assert jnp.allclose(out_bf16, ref, atol=2e-1, rtol=5e-2), "bf16 mismatch vs reference"

    print("KERNEL_OK")
</pallas_src>

<mosaic_0001>
module attributes {stable_mosaic.version = 11 : i64} {
  func.func @kernel(%arg0: i32, %arg1: memref<64x128xf32, #tpu.memory_space<vmem>>, %arg2: memref<128x128xf32, #tpu.memory_space<vmem>>, %arg3: memref<1x128xf32, #tpu.memory_space<vmem>>, %arg4: memref<128x128xf32, #tpu.memory_space<vmem>>, %arg5: memref<128x128xf32, #tpu.memory_space<vmem>>, %arg6: memref<1x128xf32, #tpu.memory_space<vmem>>, %arg7: memref<64x128xf32, #tpu.memory_space<vmem>>) attributes {dimension_semantics = [#tpu.dimension_semantics<parallel>], iteration_bounds = array<i64: 1>, scalar_prefetch = 0 : i64, scratch_operands = 0 : i64, tpu.core_type = #tpu.core_type<tc>, window_params = [{transform_indices = @transform_0, window_bounds = array<i64: 64, 128>}, {pipeline_mode = #tpu.pipeline_mode<synchronous>, transform_indices = @transform_1, window_bounds = array<i64: 128, 128>}, {pipeline_mode = #tpu.pipeline_mode<synchronous>, transform_indices = @transform_2, window_bounds = array<i64: 1, 128>}, {pipeline_mode = #tpu.pipeline_mode<synchronous>, transform_indices = @transform_3, window_bounds = array<i64: 128, 128>}, {pipeline_mode = #tpu.pipeline_mode<synchronous>, transform_indices = @transform_4, window_bounds = array<i64: 128, 128>}, {pipeline_mode = #tpu.pipeline_mode<synchronous>, transform_indices = @transform_5, window_bounds = array<i64: 1, 128>}, {transform_indices = @transform_6, window_bounds = array<i64: 64, 128>}]} {
    %c0 = arith.constant 0 : index
    %c0_0 = arith.constant 0 : index
    %0 = vector.load %arg1[%c0, %c0_0] : memref<64x128xf32, #tpu.memory_space<vmem>>, vector<64x128xf32>
    %c0_1 = arith.constant 0 : index
    %c0_2 = arith.constant 0 : index
    %1 = vector.load %arg2[%c0_1, %c0_2] : memref<128x128xf32, #tpu.memory_space<vmem>>, vector<128x128xf32>
    %c0_3 = arith.constant 0 : index
    %c0_4 = arith.constant 0 : index
    %2 = vector.load %arg3[%c0_3, %c0_4] : memref<1x128xf32, #tpu.memory_space<vmem>>, vector<1x128xf32>
    %cst = arith.constant dense<0.000000e+00> : vector<64x128xf32>
    %3 = tpu.matmul %0, %1, %cst {dimension_numbers = #tpu.dot_dimension_numbers<[1], [0], [0], [1], [0, 0, 1, 1], [], []>} : vector<64x128xf32>, vector<128x128xf32>, vector<64x128xf32> -> vector<64x128xf32>
    %4 = vector.broadcast %2 : vector<1x128xf32> to vector<64x128xf32>
    %5 = arith.addf %3, %4 : vector<64x128xf32>
    %cst_5 = arith.constant 0.000000e+00 : f32
    %6 = vector.broadcast %cst_5 : f32 to vector<64x128xf32>
    %7 = arith.maximumf %5, %6 : vector<64x128xf32>
    %c0_6 = arith.constant 0 : index
    %c0_7 = arith.constant 0 : index
    %8 = vector.load %arg4[%c0_6, %c0_7] : memref<128x128xf32, #tpu.memory_space<vmem>>, vector<128x128xf32>
    %cst_8 = arith.constant dense<0.000000e+00> : vector<64x128xf32>
    %9 = tpu.matmul %0, %8, %cst_8 {dimension_numbers = #tpu.dot_dimension_numbers<[1], [0], [0], [1], [0, 0, 1, 1], [], []>} : vector<64x128xf32>, vector<128x128xf32>, vector<64x128xf32> -> vector<64x128xf32>
    %c0_9 = arith.constant 0 : index
    %c0_10 = arith.constant 0 : index
    %10 = vector.load %arg5[%c0_9, %c0_10] : memref<128x128xf32, #tpu.memory_space<vmem>>, vector<128x128xf32>
    %cst_11 = arith.constant dense<0.000000e+00> : vector<64x128xf32>
    %11 = tpu.matmul %7, %10, %cst_11 {dimension_numbers = #tpu.dot_dimension_numbers<[1], [0], [0], [1], [0, 0, 1, 1], [], []>} : vector<64x128xf32>, vector<128x128xf32>, vector<64x128xf32> -> vector<64x128xf32>
    %12 = arith.addf %9, %11 : vector<64x128xf32>
    %c0_12 = arith.constant 0 : index
    %c0_13 = arith.constant 0 : index
    %13 = vector.load %arg6[%c0_12, %c0_13] : memref<1x128xf32, #tpu.memory_space<vmem>>, vector<1x128xf32>
    %14 = vector.broadcast %13 : vector<1x128xf32> to vector<64x128xf32>
    %15 = arith.addf %12, %14 : vector<64x128xf32>
    %c0_14 = arith.constant 0 : index
    %c0_15 = arith.constant 0 : index
    %16 = vector.load %arg7[%c0_14, %c0_15] : memref<64x128xf32, #tpu.memory_space<vmem>>, vector<64x128xf32>
    tpu.vector_store %arg7[%c0_14, %c0_15], %15 {strides = array<i32>} : memref<64x128xf32, #tpu.memory_space<vmem>>, vector<64x128xf32>,
    return
  }
  func.func @transform_0(%arg0: i32) -> (i32, i32) {
    %c0_i32 = arith.constant 0 : i32
    %c0_i32_0 = arith.constant 0 : i32
    return %arg0, %c0_i32 : i32, i32
  }
  func.func @transform_1(%arg0: i32) -> (i32, i32) {
    %c0_i32 = arith.constant 0 : i32
    %c0_i32_0 = arith.constant 0 : i32
    %c0_i32_1 = arith.constant 0 : i32
    return %c0_i32, %c0_i32_0 : i32, i32
  }
  func.func @transform_2(%arg0: i32) -> (i32, i32) {
    %c0_i32 = arith.constant 0 : i32
    %c0_i32_0 = arith.constant 0 : i32
    %c0_i32_1 = arith.constant 0 : i32
    return %c0_i32, %c0_i32_0 : i32, i32
  }
  func.func @transform_3(%arg0: i32) -> (i32, i32) {
    %c0_i32 = arith.constant 0 : i32
    %c0_i32_0 = arith.constant 0 : i32
    %c0_i32_1 = arith.constant 0 : i32
    return %c0_i32, %c0_i32_0 : i32, i32
  }
  func.func @transform_4(%arg0: i32) -> (i32, i32) {
    %c0_i32 = arith.constant 0 : i32
    %c0_i32_0 = arith.constant 0 : i32
    %c0_i32_1 = arith.constant 0 : i32
    return %c0_i32, %c0_i32_0 : i32, i32
  }
  func.func @transform_5(%arg0: i32) -> (i32, i32) {
    %c0_i32 = arith.constant 0 : i32
    %c0_i32_0 = arith.constant 0 : i32
    %c0_i32_1 = arith.constant 0 : i32
    return %c0_i32, %c0_i32_0 : i32, i32
  }
  func.func @transform_6(%arg0: i32) -> (i32, i32) {
    %c0_i32 = arith.constant 0 : i32
    %c0_i32_0 = arith.constant 0 : i32
    return %arg0, %c0_i32 : i32, i32
  }
}

</mosaic_0001>

<bundles_post_ra>
// kernel: general_model_forward.1
= control target key start
LH: loop header
LB: loop body
LE: loop exit
PB: predicated region body
PF: predicated region fallthrough
CT: control target
= control target key end

     0   :  { %11 = vsyncpa [#allocation3], 0  ;;  %s1027_s0 = inlined_call_operand.vmem [shape: f32[64,128], index: 0, kind: input, shape index: {}]   ;;  %s1028_s1 = inlined_call_operand.vmem [shape: f32[128,128], index: 1, kind: input, shape index: {}]   ;;  %s1029_s2 = inlined_call_operand.vmem [shape: f32[1,128], index: 2, kind: input, shape index: {}]   ;;  %s1030_s3 = inlined_call_operand.hbm [shape: f32[128,128], index: 3, kind: input, shape index: {}]   ;;  %s1031_s4 = inlined_call_operand.hbm [shape: f32[128,128], index: 4, kind: input, shape index: {}]   ;;  %s1032_s5 = inlined_call_operand.vmem [shape: f32[1,128], index: 5, kind: input, shape index: {}]   ;;  %s1033_s6 = inlined_call_operand.vmem [shape: f32[64,128], index: 6, kind: output, shape index: {}]  }
   0x1   :  { %12 = vsyncpa [#allocation5], 0  ;;  %s752_s21 = smov [#allocation2]  }
   0x2   :  { %s24_s22 = sshll.u32 %s752_s21, 4  ;;  %s25_s22 = int_to_ptr.vmem [resolvable:$true] %s24_s22 }
   0x3   :  { %s716_s23 = scalar_lea.vmem %s25_s22, 2048  ;;  %p721_p1 = scmp.lt.s32.totalorder %s25_s22, %s25_s22 }
   0x4   :  { %p717_p0 = scmp.ne.s32.totalorder %s25_s22, %s716_s23  ;;  %p722_p2 = scmp.lt.s32.totalorder %s716_s23, %s716_s23 }
   0x6   :  { %p723_p3 = por %p722_p2, %p721_p1 }
   0x8   :  { %p724_p4 = pnand %p723_p3, %p717_p0 }
   0xa   :  { %727 = shalt.err (!%p724_p4)
}
   0xb   :  { %s753_s24 = smov 128   ;;  %s754_s25 = smov 8  }
   0xc   :  { %30 = dma.hbm_to_vmem [thread:$0]  %s1030_s3, 2048, %s25_s22, [#allocation3], %s753_s24, %s753_s24, %s754_s25  }
   0xd   :  { %s755_s28 = smov [#allocation4]  }
   0xe   :  { %s36_s29 = sshll.u32 %s755_s28, 4  ;;  %s37_s29 = int_to_ptr.vmem [resolvable:$true] %s36_s29 }
   0xf   :  { %s736_s30 = scalar_lea.vmem %s37_s29, 2048  ;;  %p741_p6 = scmp.lt.s32.totalorder %s37_s29, %s37_s29 }
  0x10   :  { %p737_p5 = scmp.ne.s32.totalorder %s37_s29, %s736_s30  ;;  %p742_p7 = scmp.lt.s32.totalorder %s736_s30, %s736_s30 }
  0x12   :  { %p743_p8 = por %p742_p7, %p741_p6 }
  0x14   :  { %p744_p9 = pnand %p743_p8, %p737_p5 }
  0x16   :  { %747 = shalt.err (!%p744_p9)
}
  0x17   :  { %42 = dma.hbm_to_vmem [thread:$0]  %s1031_s4, 2048, %s37_s29, [#allocation5], %s753_s24, %s753_s24, %s754_s25  }
  0x18   :  { %748 = dma.done.wait [#allocation3], 2048  }
  0x19   :  { %749 = vsyncadd [#allocation3], 4294965248 }
  0x1a   :  { %750 = dma.done.wait [#allocation5], 2048  }
  0x1b   :  { %751 = vsyncadd [#allocation5], 4294965248  ;;  %v74_v0 = vld [vmem:[%s1028_s1 + $0x78] sm:$0xff]  ;;  %v73_v1 = vld [vmem:[%s1028_s1 + $0x70] sm:$0xff] }
  0x1c   :  { %540 = vmatprep.subr.mxu0 %v74_v0  ;;  %v72_v2 = vld [vmem:[%s1028_s1 + $0x68] sm:$0xff]  ;;  %v71_v3 = vld [vmem:[%s1028_s1 + $0x60] sm:$0xff]  ;;  %v70_v5 = vld [vmem:[%s1028_s1 + $0x58] sm:$0xff] }
  0x1d   :  { %541 = vmatpush3.msra.mxu0 %v74_v0  ;;  %v812_v4 = vld [vmem:[%s1027_s0] sm:$0xff]  ;;  %v69_v6 = vld [vmem:[%s1028_s1 + $0x50] sm:$0xff]  ;;  %v226_v7 = vld [vmem:[#allocation4 + $0x78] sm:$0xff] }
  0x1e   :  { %542 = vmatprep.subr.mxu0 %v73_v1  ;;  %572 = vmatprep.mubr.f32.mxu0 %v812_v4  ;;  %v225_v8 = vld [vmem:[#allocation4 + $0x70] sm:$0xff]  ;;  %v68_v9 = vld [vmem:[%s1028_s1 + $0x48] sm:$0xff]  ;;  %v67_v11 = vld [vmem:[%s1028_s1 + $0x40] sm:$0xff] }
  0x1f   :  { %543 = vmatpush3.msra.mxu0 %v73_v1  ;;  %584 = vmatprep.subr.mxu1 %v226_v7  ;;  %v224_v10 = vld [vmem:[#allocation4 + $0x68] sm:$0xff]  ;;  %v223_v12 = vld [vmem:[#allocation4 + $0x60] sm:$0xff]  ;;  %v66_v13 = vld [vmem:[%s1028_s1 + $0x38] sm:$0xff] }
  0x20   :  { %544 = vmatprep.subr.mxu0 %v72_v2  ;;  %585 = vmatpush3.msra.mxu1 %v226_v7  ;;  %v222_v14 = vld [vmem:[#allocation4 + $0x58] sm:$0xff]  ;;  %v65_v15 = vld [vmem:[%s1028_s1 + $0x30] sm:$0xff]  ;;  %v64_v17 = vld [vmem:[%s1028_s1 + $0x28] sm:$0xff] }
  0x21   :  { %545 = vmatpush3.msra.mxu0 %v72_v2  ;;  %586 = vmatprep.subr.mxu1 %v225_v8  ;;  %v221_v16 = vld [vmem:[#allocation4 + $0x50] sm:$0xff]  ;;  %v220_v18 = vld [vmem:[#allocation4 + $0x48] sm:$0xff]  ;;  %v63_v19 = vld [vmem:[%s1028_s1 + $0x20] sm:$0xff] }
  0x22   :  { %546 = vmatprep.subr.mxu0 %v71_v3  ;;  %587 = vmatpush3.msra.mxu1 %v225_v8  ;;  %v219_v20 = vld [vmem:[#allocation4 + $0x40] sm:$0xff]  ;;  %v62_v21 = vld [vmem:[%s1028_s1 + $0x18] sm:$0xff]  ;;  %v61_v23 = vld [vmem:[%s1028_s1 + $0x10] sm:$0xff] }
  0x23   :  { %547 = vmatpush3.msra.mxu0 %v71_v3  ;;  %588 = vmatprep.subr.mxu1 %v224_v10  ;;  %v218_v22 = vld [vmem:[#allocation4 + $0x38] sm:$0xff]  ;;  %v217_v24 = vld [vmem:[#allocation4 + $0x30] sm:$0xff]  ;;  %v60_v25 = vld [vmem:[%s1028_s1 + $0x8] sm:$0xff] }
  0x24   :  { %548 = vmatprep.subr.mxu0 %v70_v5  ;;  %589 = vmatpush3.msra.mxu1 %v224_v10  ;;  %v216_v26 = vld [vmem:[#allocation4 + $0x28] sm:$0xff]  ;;  %v59_v27 = vld [vmem:[%s1028_s1] sm:$0xff]  ;;  %v856_v30 = vld [vmem:[#allocation2 + $0x78] sm:$0xff] }
  0x25   :  { %549 = vmatpush3.msra.mxu0 %v70_v5  ;;  %590 = vmatprep.subr.mxu1 %v223_v12  ;;  %v215_v28 = vld [vmem:[#allocation4 + $0x20] sm:$0xff]  ;;  %v854_v29 = vld [vmem:[%s1027_s0 + $0x8] sm:$0xff]  ;;  %v861_v31 = vld [vmem:[%s1027_s0 + $0x10] sm:$0xff] }
  0x26   :  { %550 = vmatprep.subr.mxu0 %v69_v6  ;;  %591 = vmatpush3.msra.mxu1 %v223_v12  ;;  %v863_v32 = vld [vmem:[#allocation2 + $0x70] sm:$0xff]  ;;  %v214_v33 = vld [vmem:[#allocation4 + $0x18] sm:$0xff]  ;;  %v874_v35 = vld [vmem:[#allocation2 + $0x68] sm:$0xff] }
  0x27   :  { %551 = vmatpush3.msra.mxu0 %v69_v6  ;;  %592 = vmatprep.subr.mxu1 %v222_v14  ;;  %v871_v34 = vld [vmem:[%s1027_s0 + $0x18] sm:$0xff]  ;;  %v879_v36 = vld [vmem:[%s1027_s0 + $0x20] sm:$0xff]  ;;  %v891_v38 = vld [vmem:[%s1027_s0 + $0x28] sm:$0xff] }
  0x28   :  { %552 = vmatprep.subr.mxu0 %v68_v9  ;;  %593 = vmatpush3.msra.mxu1 %v222_v14  ;;  %v883_v37 = vld [vmem:[#allocation2 + $0x60] sm:$0xff]  ;;  %v894_v39 = vld [vmem:[#allocation2 + $0x58] sm:$0xff]  ;;  %v899_v40 = vld [vmem:[%s1027_s0 + $0x30] sm:$0xff] }
  0x29   :  { %553 = vmatpush3.msra.mxu0 %v68_v9  ;;  %594 = vmatprep.subr.mxu1 %v221_v16  ;;  %v903_v41 = vld [vmem:[#allocation2 + $0x50] sm:$0xff]  ;;  %v911_v42 = vld [vmem:[%s1027_s0 + $0x38] sm:$0xff]  ;;  %v914_v43 = vld [vmem:[#allocation2 + $0x48] sm:$0xff] }
  0x2a   :  { %554 = vmatprep.subr.mxu0 %v67_v11  ;;  %595 = vmatpush3.msra.mxu1 %v221_v16  ;;  %v918_v44 = vld [vmem:[#allocation2 + $0x40] sm:$0xff]  ;;  %v923_v45 = vld [vmem:[#allocation2 + $0x38] sm:$0xff]  ;;  %v928_v46 = vld [vmem:[#allocation2 + $0x30] sm:$0xff] }
  0x2b   :  { %555 = vmatpush3.msra.mxu0 %v67_v11  ;;  %596 = vmatprep.subr.mxu1 %v220_v18  ;;  %v932_v47 = vld [vmem:[#allocation2 + $0x28] sm:$0xff]  ;;  %v936_v48 = vld [vmem:[#allocation2 + $0x20] sm:$0xff]  ;;  %v942_v49 = vld [vmem:[#allocation2 + $0x18] sm:$0xff] }
  0x2c   :  { %556 = vmatprep.subr.mxu0 %v66_v13  ;;  %597 = vmatpush3.msra.mxu1 %v220_v18  ;;  %v213_v50 = vld [vmem:[#allocation4 + $0x10] sm:$0xff]  ;;  %v212_v52 = vld [vmem:[#allocation4 + $0x8] sm:$0xff]  ;;  %v211_v54 = vld [vmem:[#allocation4] sm:$0xff] }
  0x2d   :  { %557 = vmatpush3.msra.mxu0 %v66_v13  ;;  %598 = vmatprep.subr.mxu1 %v219_v20  ;;  %v946_v51 = vld [vmem:[#allocation2 + $0x10] sm:$0xff]  ;;  %v950_v53 = vld [vmem:[#allocation2 + $0x8] sm:$0xff]  ;;  %v952_v55 = vld [vmem:[#allocation2] sm:$0xff] }
  0x2e   :  { %558 = vmatprep.subr.mxu0 %v65_v15  ;;  %599 = vmatpush3.msra.mxu1 %v219_v20  ;;  %v466_v56 = vld [vmem:[%s1029_s2] ss:$0 sm:$0xff] }
  0x2f   :  { %559 = vmatpush3.msra.mxu0 %v65_v15  ;;  %600 = vmatprep.subr.mxu1 %v218_v22  ;;  %v467_v20 = vld [vmem:[%s1032_s5] ss:$0 sm:$0xff] }
  0x30   :  { %560 = vmatprep.subr.mxu0 %v64_v17  ;;  %601 = vmatpush3.msra.mxu1 %v218_v22 }
  0x31   :  { %561 = vmatpush3.msra.mxu0 %v64_v17  ;;  %602 = vmatprep.subr.mxu1 %v217_v24 }
  0x32   :  { %562 = vmatprep.subr.mxu0 %v63_v19  ;;  %603 = vmatpush3.msra.mxu1 %v217_v24 }
  0x33   :  { %563 = vmatpush3.msra.mxu0 %v63_v19  ;;  %604 = vmatprep.subr.mxu1 %v216_v26 }
  0x34   :  { %564 = vmatprep.subr.mxu0 %v62_v21  ;;  %605 = vmatpush3.msra.mxu1 %v216_v26 }
  0x35   :  { %565 = vmatpush3.msra.mxu0 %v62_v21  ;;  %606 = vmatprep.subr.mxu1 %v215_v28 }
  0x36   :  { %566 = vmatprep.subr.mxu0 %v61_v23  ;;  %607 = vmatpush3.msra.mxu1 %v215_v28 }
  0x37   :  { %567 = vmatpush3.msra.mxu0 %v61_v23  ;;  %608 = vmatprep.subr.mxu1 %v214_v33 }
  0x38   :  { %568 = vmatprep.subr.mxu0 %v60_v25  ;;  %609 = vmatpush3.msra.mxu1 %v214_v33 }
  0x39   :  { %569 = vmatpush3.msra.mxu0 %v60_v25  ;;  %610 = vmatprep.subr.mxu1 %v213_v50 }
  0x3a   :  { %570 = vmatprep.subr.mxu0 %v59_v27  ;;  %611 = vmatpush3.msra.mxu1 %v213_v50 }
  0x3b   :  { %571 = vmatpush3.msra.mxu0 %v59_v27  ;;  %612 = vmatprep.subr.mxu1 %v212_v52 }
  0x3c   :  { %573 = vmatmul.mubr.f32.vlgmr.msra.gmra.mxu0 %v854_v29  ;;  %628 = vmatprep.subr.mxu0 %v856_v30 }
  0x3d   :  { %575 = vmatprep.mubr.f32.mxu0 %v861_v31  ;;  %629 = vmatpush3.msra.mxu0 %v856_v30 }
  0x3e   :  { %630 = vmatprep.subr.mxu0 %v863_v32  ;;  %613 = vmatpush3.msra.mxu1 %v212_v52 }
  0x3f   :  { %631 = vmatpush3.msra.mxu0 %v863_v32  ;;  %614 = vmatprep.subr.mxu1 %v211_v54 }
  0x40   :  { %576 = vmatmul.mubr.f32.gmra.mxu0 %v871_v34  ;;  %632 = vmatprep.subr.mxu0 %v874_v35 }
  0x41   :  { %578 = vmatprep.mubr.f32.mxu0 %v879_v36  ;;  %633 = vmatpush3.msra.mxu0 %v874_v35 }
  0x42   :  { %634 = vmatprep.subr.mxu0 %v883_v37  ;;  %615 = vmatpush3.msra.mxu1 %v211_v54 }
  0x43   :  { %635 = vmatpush3.msra.mxu0 %v883_v37  ;;  %672 = vmatprep.subr.mxu1 %v856_v30 }
  0x44   :  { %579 = vmatmul.mubr.f32.gmra.mxu0 %v891_v38  ;;  %636 = vmatprep.subr.mxu0 %v894_v39 }
  0x45   :  { %581 = vmatprep.mubr.f32.mxu0 %v899_v40  ;;  %637 = vmatpush3.msra.mxu0 %v894_v39 }
  0x46   :  { %638 = vmatprep.subr.mxu0 %v903_v41 }
  0x47   :  { %639 = vmatpush3.msra.mxu0 %v903_v41 }
  0x48   :  { %582 = vmatmul.mubr.f32.gmra.mxu0 %v911_v42  ;;  %640 = vmatprep.subr.mxu0 %v914_v43 }
  0x49   :  { %641 = vmatpush3.msra.mxu0 %v914_v43  ;;  %660 = vmatprep.mubr.f32.mxu0 %v812_v4 }
  0x4a   :  { %642 = vmatprep.subr.mxu0 %v918_v44 }
  0x4b   :  { %643 = vmatpush3.msra.mxu0 %v918_v44 }
  0x4c   :  { %644 = vmatprep.subr.mxu0 %v923_v45 }
  0x4d   :  { %645 = vmatpush3.msra.mxu0 %v923_v45 }
  0x4e   :  { %646 = vmatprep.subr.mxu0 %v928_v46 }
  0x4f   :  { %647 = vmatpush3.msra.mxu0 %v928_v46 }
  0x50   :  { %648 = vmatprep.subr.mxu0 %v932_v47 }
  0x51   :  { %649 = vmatpush3.msra.mxu0 %v932_v47 }
  0x52   :  { %650 = vmatprep.subr.mxu0 %v936_v48 }
  0x53   :  { %651 = vmatpush3.msra.mxu0 %v936_v48 }
  0x54   :  { %652 = vmatprep.subr.mxu0 %v942_v49 }
  0x55   :  { %653 = vmatpush3.msra.mxu0 %v942_v49 }
  0x56   :  { %654 = vmatprep.subr.mxu0 %v946_v51 }
  0x57   :  { %655 = vmatpush3.msra.mxu0 %v946_v51 }
  0x58   :  { %656 = vmatprep.subr.mxu0 %v950_v53 }
  0x59   :  { %657 = vmatpush3.msra.mxu0 %v950_v53 }
  0x5a   :  { %658 = vmatprep.subr.mxu0 %v952_v55 }
  0x5b   :  { %659 = vmatpush3.msra.mxu0 %v952_v55 }
  0x5c   :  { %661 = vmatmul.mubr.f32.vlgmr.msra.gmra.mxu0 %v854_v29 }
  0x5d   :  { %663 = vmatprep.mubr.f32.mxu0 %v861_v31 }
  0x60   :  { %664 = vmatmul.mubr.f32.gmra.mxu0 %v871_v34 }
  0xfc   :  { %v574_v57 = vpop.f32.mrf.mxu0 }
  0xfd   :  { %v154_v58 = vadd.f32 %v574_v57, %v466_v56 }
  0xfe   :  { %v148_v59 = vpop.f32.mrf.mxu0 }
  0xff   :  { %v149_v60 = vadd.f32 %v466_v56, %v148_v59  ;;  %v188_v0 = vmax.f32 %v154_v58, 0.0 }
 0x100   :  { %v577_v61 = vpop.f32.mrf.mxu0 }
 0x101   :  { %v187_v62 = vmax.f32 %v149_v60, 0.0  ;;  %v164_v63 = vadd.f32 %v577_v61, %v466_v56 }
 0x102   :  { %v158_v1 = vpop.f32.mrf.mxu0 }
 0x103   :  { %616 = vmatprep.mubr.f32.mxu1 %v187_v62  ;;  %v159_v2 = vadd.f32 %v466_v56, %v158_v1  ;;  %v190_v3 = vmax.f32 %v164_v63, 0.0 }
 0x104   :  { %617 = vmatmul.mubr.f32.vlgmr.msra.gmra.mxu1 %v188_v0  ;;  %v580_v4 = vpop.f32.mrf.mxu0 }
 0x105   :  { %688 = vmatpush3.msra.mxu1 %v856_v30  ;;  %v189_v5 = vmax.f32 %v159_v2, 0.0  ;;  %v174_v6 = vadd.f32 %v580_v4, %v466_v56 }
 0x106   :  { %673 = vmatprep.subr.mxu1 %v863_v32  ;;  %v168_v7 = vpop.f32.mrf.mxu0 }
 0x107   :  { %689 = vmatpush3.msra.mxu1 %v863_v32  ;;  %v169_v8 = vadd.f32 %v466_v56, %v168_v7  ;;  %619 = vmatprep.mubr.f32.mxu1 %v189_v5  ;;  %v192_v9 = vmax.f32 %v174_v6, 0.0 }
 0x108   :  { %674 = vmatprep.subr.mxu1 %v874_v35  ;;  %v583_v10 = vpop.f32.mrf.mxu0  ;;  %620 = vmatmul.mubr.f32.gmra.mxu1 %v190_v3 }
 0x109   :  { %690 = vmatpush3.msra.mxu1 %v874_v35  ;;  %v191_v11 = vmax.f32 %v169_v8, 0.0  ;;  %v184_v12 = vadd.f32 %v583_v10, %v466_v56 }
 0x10a   :  { %675 = vmatprep.subr.mxu1 %v883_v37  ;;  %v178_v13 = vpop.f32.mrf.mxu0 }
 0x10b   :  { %691 = vmatpush3.msra.mxu1 %v883_v37  ;;  %v179_v14 = vadd.f32 %v466_v56, %v178_v13  ;;  %622 = vmatprep.mubr.f32.mxu1 %v191_v11  ;;  %v194_v15 = vmax.f32 %v184_v12, 0.0 }
 0x10c   :  { %676 = vmatprep.subr.mxu1 %v894_v39  ;;  %623 = vmatmul.mubr.f32.gmra.mxu1 %v192_v9 }
 0x10d   :  { %692 = vmatpush3.msra.mxu1 %v894_v39  ;;  %v193_v16 = vmax.f32 %v179_v14, 0.0 }
 0x10e   :  { %677 = vmatprep.subr.mxu1 %v903_v41 }
 0x10f   :  { %693 = vmatpush3.msra.mxu1 %v903_v41  ;;  %625 = vmatprep.mubr.f32.mxu1 %v193_v16 }
 0x110   :  { %678 = vmatprep.subr.mxu1 %v914_v43  ;;  %626 = vmatmul.mubr.f32.gmra.mxu1 %v194_v15 }
 0x111   :  { %694 = vmatpush3.msra.mxu1 %v914_v43  ;;  %666 = vmatprep.mubr.f32.mxu1 %v879_v36 }
 0x112   :  { %679 = vmatprep.subr.mxu1 %v918_v44 }
 0x113   :  { %695 = vmatpush3.msra.mxu1 %v918_v44 }
 0x114   :  { %680 = vmatprep.subr.mxu1 %v923_v45 }
 0x115   :  { %696 = vmatpush3.msra.mxu1 %v923_v45 }
 0x116   :  { %681 = vmatprep.subr.mxu1 %v928_v46 }
 0x117   :  { %697 = vmatpush3.msra.mxu1 %v928_v46 }
 0x118   :  { %682 = vmatprep.subr.mxu1 %v932_v47 }
 0x119   :  { %698 = vmatpush3.msra.mxu1 %v932_v47 }
 0x11a   :  { %683 = vmatprep.subr.mxu1 %v936_v48 }
 0x11b   :  { %699 = vmatpush3.msra.mxu1 %v936_v48 }
 0x11c   :  { %684 = vmatprep.subr.mxu1 %v942_v49  ;;  %v662_v17 = vpop.f32.mrf.mxu0 }
 0x11d   :  { %700 = vmatpush3.msra.mxu1 %v942_v49 }
 0x11e   :  { %685 = vmatprep.subr.mxu1 %v946_v51  ;;  %v398_v18 = vpop.f32.mrf.mxu0 }
 0x11f   :  { %701 = vmatpush3.msra.mxu1 %v946_v51 }
 0x120   :  { %686 = vmatprep.subr.mxu1 %v950_v53  ;;  %v665_v21 = vpop.f32.mrf.mxu0 }
 0x121   :  { %702 = vmatpush3.msra.mxu1 %v950_v53 }
 0x122   :  { %687 = vmatprep.subr.mxu1 %v952_v55  ;;  %v408_v27 = vpop.f32.mrf.mxu0 }
 0x123   :  { %703 = vmatpush3.msra.mxu1 %v952_v55 }
 0x124   :  { %667 = vmatmul.mubr.f32.vlgmr.msra.gmra.mxu1 %v891_v38 }
 0x125   :  { %669 = vmatprep.mubr.f32.mxu1 %v899_v40 }
 0x128   :  { %670 = vmatmul.mubr.f32.gmra.mxu1 %v911_v42 }
 0x1c4   :  { %v618_v19 = vpop.f32.mrf.mxu1 }
 0x1c5   :  { %v404_v22 = vadd.f32 %v662_v17, %v618_v19 }
 0x1c6   :  { %v293_v23 = vpop.f32.mrf.mxu1 }
 0x1c7   :  { %v445_v24 = vadd.f32 %v467_v20, %v404_v22  ;;  %v399_v25 = vadd.f32 %v398_v18, %v293_v23 }
 0x1c8   :  { %v621_v26 = vpop.f32.mrf.mxu1 }
 0x1c9   :  { %453 = vst [vmem:[%s1033_s6 + $0x8] sm:$0xff] %v445_v24  ;;  %v444_v28 = vadd.f32 %v467_v20, %v399_v25  ;;  %v414_v29 = vadd.f32 %v665_v21, %v621_v26 }
 0x1ca   :  { %v303_v30 = vpop.f32.mrf.mxu1 }
 0x1cb   :  { %452 = vst [vmem:[%s1033_s6] sm:$0xff] %v444_v28  ;;  %v447_v31 = vadd.f32 %v467_v20, %v414_v29  ;;  %v409_v32 = vadd.f32 %v408_v27, %v303_v30 }
 0x1cc   :  { %v624_v34 = vpop.f32.mrf.mxu1 }
 0x1cd   :  { %455 = vst [vmem:[%s1033_s6 + $0x18] sm:$0xff] %v447_v31  ;;  %v446_v33 = vadd.f32 %v467_v20, %v409_v32 }
 0x1ce   :  { %v313_v35 = vpop.f32.mrf.mxu1 }
 0x1cf   :  { %454 = vst [vmem:[%s1033_s6 + $0x10] sm:$0xff] %v446_v33 }
 0x1d0   :  { %v627_v36 = vpop.f32.mrf.mxu1 }
 0x1d2   :  { %v323_v37 = vpop.f32.mrf.mxu1 }
 0x1e4   :  { %v668_v38 = vpop.f32.mrf.mxu1 }
 0x1e5   :  { %v424_v39 = vadd.f32 %v668_v38, %v624_v34 }
 0x1e6   :  { %v418_v40 = vpop.f32.mrf.mxu1 }
 0x1e7   :  { %v449_v41 = vadd.f32 %v467_v20, %v424_v39  ;;  %v419_v42 = vadd.f32 %v418_v40, %v313_v35 }
 0x1e8   :  { %v671_v43 = vpop.f32.mrf.mxu1 }
 0x1e9   :  { %457 = vst [vmem:[%s1033_s6 + $0x28] sm:$0xff] %v449_v41  ;;  %v448_v44 = vadd.f32 %v467_v20, %v419_v42  ;;  %v434_v45 = vadd.f32 %v671_v43, %v627_v36 }
 0x1ea   :  { %v428_v46 = vpop.f32.mrf.mxu1 }
 0x1eb   :  { %456 = vst [vmem:[%s1033_s6 + $0x20] sm:$0xff] %v448_v44  ;;  %v451_v47 = vadd.f32 %v467_v20, %v434_v45  ;;  %v429_v48 = vadd.f32 %v428_v46, %v323_v37 }
 0x1ed   :  { %459 = vst [vmem:[%s1033_s6 + $0x38] sm:$0xff] %v451_v47  ;;  %v450_v49 = vadd.f32 %v467_v20, %v429_v48 }
 0x1ef   :  { %458 = vst [vmem:[%s1033_s6 + $0x30] sm:$0xff] %v450_v49 }
 0x1f0   :  { %464 = vsyncpa [#allocation3], 1 }
 0x1f1   :  { %465 = vsyncpa [#allocation5], 1 }

</bundles_post_ra>
